<compile_context>
chip_gen: v6e
topology: v6e:2x2x1
jax: 0.10.0
libtpu: 0.0.40
codegen_flags: <defaults>
</compile_context>

<pallas_src>
import jax
import jax.numpy as jnp
from jax.experimental import pallas as pl
from jax.experimental.pallas import tpu as pltpu

# ----------------------------- problem sizes -----------------------------
B, C_IN, H, W = 2, 3, 16, 16          # small image, NCHW at the boundary
K, STRIDE, PAD = 3, 2, 1              # stem conv of the proxy backbone
C_FEAT = 32                           # stand-in for EfficientNet-b5's 2048 chans
HO = (H + 2 * PAD - K) // STRIDE + 1  # 8
WO = (W + 2 * PAD - K) // STRIDE + 1  # 8
N_DROPOUT = 5                         # len(self.dropouts) -- identity in eval
KKC = K * K * C_IN                    # 27
KKC_B = KKC + 1                       # 28: one extra ones-column folds in b1
KKC_PAD = 32                          # contraction dim padded to sublane multiple
OUT_LANES = 128                       # lane-dense output tile width


# ------------------------------- kernel ----------------------------------
def model_kernel(patches_ref, w1_ref, w2t_ref, b2_ref, out_ref):
    # Stem conv as im2col matmul (single MXU push); stem bias b1 is folded in
    # via the ones column of `patches` / extra row of w1.  Swish (SiLU) on EUP.
    h = jnp.dot(patches_ref[...], w1_ref[...],
                preferred_element_type=jnp.float32)            # [B*HO*WO, C_FEAT]
    h = h * jax.nn.sigmoid(h)                                  # swish

    # AdaptiveAvgPool2d(1) + Flatten: per-batch mean over HO*WO positions.
    # Reshape only splits the sublane dim (128 -> 2x64, 64 % 8 == 0); the
    # reduction runs on the XLU slot.
    pooled = jnp.mean(h.reshape(B, HO * WO, C_FEAT), axis=1)   # [B, C_FEAT]

    # Head: 5x {Dropout (identity in eval), shared fc}, averaged == single fc.
    # fc output width is 1 -> keep it off the MXU: VPU multiply + XLU row-sum.
    res = (jnp.sum(pooled * w2t_ref[...], axis=-1, keepdims=True)
           + b2_ref[0, 0])                                     # [B, 1]

    # Lane-dense store: broadcast across 128 lanes -> unmasked full-lane vst.
    out_ref[...] = jnp.broadcast_to(res, (B, OUT_LANES))


# ------------------------------- wrapper ----------------------------------
@jax.jit
def model_forward(image_nchw, w1, b1, w2, b2):
    # NCHW -> NHWC (kernel layout), pad, and build im2col patches (glue fused
    # into this single jitted executable together with the pallas_call).
    x = jnp.transpose(image_nchw, (0, 2, 3, 1)).astype(jnp.float32)       # [B,H,W,C_IN]
    xp = jnp.pad(x, ((0, 0), (PAD, PAD), (PAD, PAD), (0, 0)))
    taps = []
    for kh in range(K):
        for kw in range(K):
            taps.append(xp[:, kh:kh + STRIDE * HO:STRIDE,
                           kw:kw + STRIDE * WO:STRIDE, :])                 # [B,HO,WO,C_IN]
    patches = jnp.concatenate(taps, axis=-1).reshape(B * HO * WO, KKC)     # [128, 27]

    # Fold the stem bias b1 into the matmul: ones column in patches (col 27),
    # b1 appended as row 27 of w1.  Remaining columns zero-padded 28 -> 32.
    ones_col = jnp.ones((B * HO * WO, 1), jnp.float32)
    patches = jnp.concatenate([patches, ones_col], axis=-1)                # [128, 28]
    patches = jnp.pad(patches, ((0, 0), (0, KKC_PAD - KKC_B)))             # [128, 32]
    w1p = jnp.concatenate([w1, b1], axis=0)                                # [28, C_FEAT]
    w1p = jnp.pad(w1p, ((0, KKC_PAD - KKC_B), (0, 0)))                     # [32, C_FEAT]
    w2t = jnp.transpose(w2)                                                # [1, C_FEAT]

    # Single-block call: no grid, no pipelining, whole arrays resident in VMEM,
    # head bias b2 as an SMEM scalar.
    out = pl.pallas_call(
        model_kernel,
        out_shape=jax.ShapeDtypeStruct((B, OUT_LANES), jnp.float32),
        in_specs=[
            pl.BlockSpec(memory_space=pltpu.MemorySpace.VMEM),   # patches
            pl.BlockSpec(memory_space=pltpu.MemorySpace.VMEM),   # w1p (bias folded)
            pl.BlockSpec(memory_space=pltpu.MemorySpace.VMEM),   # w2t
            pl.BlockSpec(memory_space=pltpu.MemorySpace.SMEM),   # b2 scalar
        ],
        out_specs=pl.BlockSpec(memory_space=pltpu.MemorySpace.VMEM),
    )(patches, w1p, w2t, b2)
    return out[:, :1]                                                      # [B, 1]


# ------------------------------ params -----------------------------------
def init_params(key):
    k1, k2, k3, k4 = jax.random.split(key, 4)
    # stem conv proxy: weight rows ordered as (kh, kw, c_in) to match patches.
    w1 = 0.1 * jax.random.normal(k1, (KKC, C_FEAT), jnp.float32)
    b1 = 0.01 * jax.random.normal(k2, (1, C_FEAT), jnp.float32)
    # fc head: nn.Linear(out_chns, 1)
    w2 = 0.1 * jax.random.normal(k3, (C_FEAT, 1), jnp.float32)
    b2 = 0.01 * jax.random.normal(k4, (1, 1), jnp.float32)
    return w1, b1, w2, b2


# ------------------------------ reference ---------------------------------
def reference_forward(image_nchw, w1, b1, w2, b2):
    x = jnp.transpose(image_nchw, (0, 2, 3, 1)).astype(jnp.float32)
    xp = jnp.pad(x, ((0, 0), (PAD, PAD), (PAD, PAD), (0, 0)))
    taps = []
    for kh in range(K):
        for kw in range(K):
            taps.append(xp[:, kh:kh + STRIDE * HO:STRIDE,
                           kw:kw + STRIDE * WO:STRIDE, :])
    patches = jnp.concatenate(taps, axis=-1).reshape(B * HO * WO, KKC)
    h = patches @ w1 + b1
    h = h * jax.nn.sigmoid(h)
    pooled = h.reshape(B, HO * WO, C_FEAT).mean(axis=1)
    # 5x {dropout(eval)=identity, fc} averaged == single fc.
    out = pooled @ w2 + b2
    return out


# -------------------------------- main ------------------------------------
if __name__ == "__main__":
    key = jax.random.PRNGKey(0)
    k_img, k_par = jax.random.split(key)
    image = jax.random.normal(k_img, (B, C_IN, H, W), jnp.float32)   # NCHW, like PyTorch
    w1, b1, w2, b2 = init_params(k_par)

    out = model_forward(image, w1, b1, w2, b2)
    out = jax.block_until_ready(out)

    ref = reference_forward(image, w1, b1, w2, b2)
    assert out.shape == (B, 1)
    assert jnp.allclose(out, ref, atol=1e-4, rtol=1e-4), (out, ref)

    print("KERNEL_OK")
</pallas_src>

<mosaic_0001>
module attributes {stable_mosaic.version = 11 : i64} {
  func.func @model_kernel(%arg0: memref<128x32xf32, #tpu.memory_space<vmem>>, %arg1: memref<32x32xf32, #tpu.memory_space<vmem>>, %arg2: memref<1x32xf32, #tpu.memory_space<vmem>>, %arg3: memref<1x1xf32, #tpu.memory_space<smem>>, %arg4: memref<2x128xf32, #tpu.memory_space<vmem>>) attributes {dimension_semantics = [], scalar_prefetch = 0 : i64, scratch_operands = 0 : i64, tpu.core_type = #tpu.core_type<tc>} {
    %c0 = arith.constant 0 : index
    %c0_0 = arith.constant 0 : index
    %0 = vector.load %arg0[%c0, %c0_0] : memref<128x32xf32, #tpu.memory_space<vmem>>, vector<128x32xf32>
    %c0_1 = arith.constant 0 : index
    %c0_2 = arith.constant 0 : index
    %1 = vector.load %arg1[%c0_1, %c0_2] : memref<32x32xf32, #tpu.memory_space<vmem>>, vector<32x32xf32>
    %cst = arith.constant dense<0.000000e+00> : vector<128x32xf32>
    %2 = tpu.matmul %0, %1, %cst {dimension_numbers = #tpu.dot_dimension_numbers<[1], [0], [0], [1], [0, 0, 1, 1], [], []>} : vector<128x32xf32>, vector<32x32xf32>, vector<128x32xf32> -> vector<128x32xf32>
    %3 = arith.negf %2 : vector<128x32xf32>
    %4 = math.exp %3 : vector<128x32xf32>
    %cst_3 = arith.constant 1.000000e+00 : f32
    %5 = vector.broadcast %cst_3 : f32 to vector<128x32xf32>
    %6 = arith.addf %5, %4 : vector<128x32xf32>
    %7 = arith.divf %5, %6 : vector<128x32xf32>
    %8 = arith.mulf %2, %7 : vector<128x32xf32>
    %9 = vector.shape_cast %8 : vector<128x32xf32> to vector<2x64x32xf32>
    %cst_4 = arith.constant dense<0.000000e+00> : vector<2x32xf32>
    %10 = vector.multi_reduction <add>, %9, %cst_4 [1] : vector<2x64x32xf32> to vector<2x32xf32>
    %cst_5 = arith.constant 6.400000e+01 : f32
    %11 = vector.broadcast %cst_5 : f32 to vector<2x32xf32>
    %12 = arith.divf %10, %11 : vector<2x32xf32>
    %c0_6 = arith.constant 0 : index
    %c0_7 = arith.constant 0 : index
    %13 = vector.load %arg2[%c0_6, %c0_7] : memref<1x32xf32, #tpu.memory_space<vmem>>, vector<1x32xf32>
    %14 = vector.broadcast %13 : vector<1x32xf32> to vector<2x32xf32>
    %15 = arith.mulf %12, %14 : vector<2x32xf32>
    %cst_8 = arith.constant dense<0.000000e+00> : vector<2xf32>
    %16 = vector.multi_reduction <add>, %15, %cst_8 [1] : vector<2x32xf32> to vector<2xf32>
    %17 = vector.shape_cast %16 : vector<2xf32> to vector<2x1xf32>
    %c0_9 = arith.constant 0 : index
    %c0_10 = arith.constant 0 : index
    %18 = memref.load %arg3[%c0_9, %c0_10] : memref<1x1xf32, #tpu.memory_space<smem>>
    %19 = vector.broadcast %18 : f32 to vector<2x1xf32>
    %20 = arith.addf %17, %19 : vector<2x1xf32>
    %21 = vector.shape_cast %20 : vector<2x1xf32> to vector<2x1xf32>
    %22 = vector.broadcast %21 : vector<2x1xf32> to vector<2x128xf32>
    %c0_11 = arith.constant 0 : index
    %c0_12 = arith.constant 0 : index
    %23 = vector.load %arg4[%c0_11, %c0_12] : memref<2x128xf32, #tpu.memory_space<vmem>>, vector<2x128xf32>
    tpu.vector_store %arg4[%c0_11, %c0_12], %22 {strides = array<i32>} : memref<2x128xf32, #tpu.memory_space<vmem>>, vector<2x128xf32>,
    return
  }
}

</mosaic_0001>

<bundles_post_ra>
// kernel: model_forward.1
= control target key start
LH: loop header
LB: loop body
LE: loop exit
PB: predicated region body
PF: predicated region fallthrough
CT: control target
= control target key end

     0   :  { %vm38_vm0 = vcmask 261120   ;;  %vm401_vm1 = vcmask 1041409   ;;  %vm404_vm2 = vcmask 254976   ;;  %s763_s1 = inlined_call_operand.vmem [shape: f32[32,32], index: 1, kind: input, shape index: {}]   ;;  %s764_s0 = inlined_call_operand.vmem [shape: f32[128,32], index: 0, kind: input, shape index: {}]   ;;  %s765_s2 = inlined_call_operand.vmem [shape: f32[1,32], index: 2, kind: input, shape index: {}]   ;;  %s766_s3 = inlined_call_operand.<no memory space> [shape: f32[1,1], index: 3, kind: input, shape index: {}]   ;;  %s767_s4 = inlined_call_operand.vmem [shape: f32[2,128], index: 4, kind: output, shape index: {}]  }
   0x1   :  { %v37_v0 = vld [vmem:[%s763_s1 + $0x18] sm:$0xff]  ;;  %v36_v1 = vld [vmem:[%s763_s1 + $0x10] sm:$0xff]  ;;  %v35_v2 = vld [vmem:[%s763_s1 + $0x8] sm:$0xff] }
   0x2   :  { %469 = vmatprep.subr.mxu0 %v37_v0  ;;  %501 = vmatprep.subr.mxu1 %v37_v0  ;;  %v34_v3 = vld [vmem:[%s763_s1] sm:$0xff]  ;;  %v19_v6 = vld [vmem:[%s764_s0 + $0x8] sm:$0xff]  ;;  %v20_v8 = vld [vmem:[%s764_s0 + $0x10] sm:$0xff] }
   0x3   :  { %470 = vmatpush3.msra.mxu0 %v37_v0  ;;  %505 = vmatpush3.msra.mxu1 %v37_v0  ;;  %v18_v4 = vld [vmem:[%s764_s0] sm:$0xff]  ;;  %v27_v7 = vld [vmem:[%s764_s0 + $0x48] sm:$0xff]  ;;  %v28_v9 = vld [vmem:[%s764_s0 + $0x50] sm:$0xff] }
   0x4   :  { %471 = vmatprep.subr.mxu0 %v36_v1  ;;  %502 = vmatprep.subr.mxu1 %v36_v1  ;;  %v26_v5 = vld [vmem:[%s764_s0 + $0x40] sm:$0xff]  ;;  %v21_v10 = vld [vmem:[%s764_s0 + $0x18] sm:$0xff]  ;;  %v23_v14 = vld [vmem:[%s764_s0 + $0x28] sm:$0xff] }
   0x5   :  { %472 = vmatpush3.msra.mxu0 %v36_v1  ;;  %506 = vmatpush3.msra.mxu1 %v36_v1  ;;  %v29_v11 = vld [vmem:[%s764_s0 + $0x58] sm:$0xff]  ;;  %v22_v12 = vld [vmem:[%s764_s0 + $0x20] sm:$0xff]  ;;  %v31_v15 = vld [vmem:[%s764_s0 + $0x68] sm:$0xff] }
   0x6   :  { %473 = vmatprep.subr.mxu0 %v35_v2  ;;  %503 = vmatprep.subr.mxu1 %v35_v2  ;;  %v30_v13 = vld [vmem:[%s764_s0 + $0x60] sm:$0xff]  ;;  %v24_v16 = vld [vmem:[%s764_s0 + $0x30] sm:$0xff]  ;;  %v25_v18 = vld [vmem:[%s764_s0 + $0x38] sm:$0xff] }
   0x7   :  { %474 = vmatpush3.msra.mxu0 %v35_v2  ;;  %507 = vmatpush3.msra.mxu1 %v35_v2  ;;  %v32_v17 = vld [vmem:[%s764_s0 + $0x70] sm:$0xff]  ;;  %v33_v19 = vld [vmem:[%s764_s0 + $0x78] sm:$0xff] }
   0x8   :  { %475 = vmatprep.subr.mxu0 %v34_v3  ;;  %504 = vmatprep.subr.mxu1 %v34_v3 }
   0x9   :  { %476 = vmatpush3.msra.mxu0 %v34_v3  ;;  %508 = vmatpush3.msra.mxu1 %v34_v3 }
   0xa   :  { %477 = vmatprep.mubr.msk.f32.mxu0 %vm38_vm0, %v18_v4  ;;  %489 = vmatprep.mubr.msk.f32.mxu1 %vm38_vm0, %v26_v5 }
   0xb   :  { %478 = vmatmul.mubr.msk.f32.vlgmr.msra.gmra.mxu0 %vm38_vm0, %v19_v6  ;;  %490 = vmatmul.mubr.msk.f32.vlgmr.msra.gmra.mxu1 %vm38_vm0, %v27_v7 }
   0xc   :  { %480 = vmatprep.mubr.msk.f32.mxu0 %vm38_vm0, %v20_v8  ;;  %492 = vmatprep.mubr.msk.f32.mxu1 %vm38_vm0, %v28_v9 }
   0xf   :  { %481 = vmatmul.mubr.msk.f32.gmra.mxu0 %vm38_vm0, %v21_v10  ;;  %493 = vmatmul.mubr.msk.f32.gmra.mxu1 %vm38_vm0, %v29_v11 }
  0x10   :  { %483 = vmatprep.mubr.msk.f32.mxu0 %vm38_vm0, %v22_v12  ;;  %495 = vmatprep.mubr.msk.f32.mxu1 %vm38_vm0, %v30_v13 }
  0x13   :  { %484 = vmatmul.mubr.msk.f32.gmra.mxu0 %vm38_vm0, %v23_v14  ;;  %496 = vmatmul.mubr.msk.f32.gmra.mxu1 %vm38_vm0, %v31_v15 }
  0x14   :  { %486 = vmatprep.mubr.msk.f32.mxu0 %vm38_vm0, %v24_v16  ;;  %498 = vmatprep.mubr.msk.f32.mxu1 %vm38_vm0, %v32_v17 }
  0x17   :  { %487 = vmatmul.mubr.msk.f32.gmra.mxu0 %vm38_vm0, %v25_v18  ;;  %499 = vmatmul.mubr.msk.f32.gmra.mxu1 %vm38_vm0, %v33_v19 }
  0xcb   :  { %v674_v20 = vpop.f32.mrf.mxu0  ;;  %v676_v21 = vpop.f32.mrf.mxu1 }
  0xcc   :  { %v433_v22 = vmul.f32 -1.442695, %v674_v20  ;;  %v441_v23 = vmul.f32 -1.442695, %v676_v21 }
  0xcd   :  { %v680_v24 = vpop.f32.mrf.mxu0  ;;  %v682_v25 = vpop.f32.mrf.mxu1 }
  0xce   :  { %509 = vpow2.f32 %v433_v22  ;;  %v432_v26 = vmul.f32 -1.442695, %v680_v24  ;;  %v440_v27 = vmul.f32 -1.442695, %v682_v25 }
  0xcf   :  { %511 = vpow2.f32 %v441_v23  ;;  %v686_v28 = vpop.f32.mrf.mxu0  ;;  %v688_v29 = vpop.f32.mrf.mxu1 }
  0xd0   :  { %513 = vpow2.f32 %v432_v26  ;;  %v435_v30 = vmul.f32 -1.442695, %v686_v28  ;;  %v443_v31 = vmul.f32 -1.442695, %v688_v29 }
  0xd1   :  { %515 = vpow2.f32 %v440_v27  ;;  %v692_v32 = vpop.f32.mrf.mxu0  ;;  %v694_v33 = vpop.f32.mrf.mxu1 }
  0xd2   :  { %517 = vpow2.f32 %v435_v30  ;;  %v434_v34 = vmul.f32 -1.442695, %v692_v32  ;;  %v442_v35 = vmul.f32 -1.442695, %v694_v33 }
  0xd3   :  { %519 = vpow2.f32 %v443_v31  ;;  %v698_v36 = vpop.f32.mrf.mxu0  ;;  %v700_v37 = vpop.f32.mrf.mxu1 }
  0xd4   :  { %521 = vpow2.f32 %v434_v34  ;;  %v437_v38 = vmul.f32 -1.442695, %v698_v36  ;;  %v445_v39 = vmul.f32 -1.442695, %v700_v37 }
  0xd5   :  { %523 = vpow2.f32 %v442_v35  ;;  %v704_v40 = vpop.f32.mrf.mxu0  ;;  %v706_v41 = vpop.f32.mrf.mxu1 }
  0xd6   :  { %525 = vpow2.f32 %v437_v38  ;;  %v436_v42 = vmul.f32 -1.442695, %v704_v40  ;;  %v444_v43 = vmul.f32 -1.442695, %v706_v41 }
  0xd7   :  { %527 = vpow2.f32 %v445_v39  ;;  %v710_v44 = vpop.f32.mrf.mxu0  ;;  %v712_v45 = vpop.f32.mrf.mxu1 }
  0xd8   :  { %529 = vpow2.f32 %v436_v42  ;;  %v439_v46 = vmul.f32 -1.442695, %v710_v44  ;;  %v447_v47 = vmul.f32 -1.442695, %v712_v45 }
  0xd9   :  { %531 = vpow2.f32 %v444_v43  ;;  %v716_v48 = vpop.f32.mrf.mxu0  ;;  %v718_v49 = vpop.f32.mrf.mxu1 }
  0xda   :  { %533 = vpow2.f32 %v439_v46  ;;  %v438_v50 = vmul.f32 -1.442695, %v716_v48  ;;  %v446_v51 = vmul.f32 -1.442695, %v718_v49 }
  0xdb   :  { %v510_v52 = vpop.eup %509  ;;  %535 = vpow2.f32 %v447_v47 }
  0xdc   :  { %v512_v53 = vpop.eup %511  ;;  %v281_v54 = vadd.f32 1.0, %v510_v52  ;;  %537 = vpow2.f32 %v438_v50 }
  0xdd   :  { %v514_v55 = vpop.eup %513  ;;  %v289_v56 = vadd.f32 1.0, %v512_v53  ;;  %539 = vpow2.f32 %v446_v51 }
  0xde   :  { %v516_v57 = vpop.eup %515  ;;  %541 = vrcp.f32 %v281_v54  ;;  %v280_v58 = vadd.f32 1.0, %v514_v55 }
  0xdf   :  { %v518_v59 = vpop.eup %517  ;;  %543 = vrcp.f32 %v289_v56  ;;  %v288_v60 = vadd.f32 1.0, %v516_v57 }
  0xe0   :  { %v520_v61 = vpop.eup %519  ;;  %545 = vrcp.f32 %v280_v58  ;;  %v283_v62 = vadd.f32 1.0, %v518_v59 }
  0xe1   :  { %v522_v63 = vpop.eup %521  ;;  %547 = vrcp.f32 %v288_v60  ;;  %v291_v0 = vadd.f32 1.0, %v520_v61 }
  0xe2   :  { %v524_v1 = vpop.eup %523  ;;  %549 = vrcp.f32 %v283_v62  ;;  %v282_v2 = vadd.f32 1.0, %v522_v63 }
  0xe3   :  { %v526_v3 = vpop.eup %525  ;;  %551 = vrcp.f32 %v291_v0  ;;  %v290_v4 = vadd.f32 1.0, %v524_v1 }
  0xe4   :  { %v528_v5 = vpop.eup %527  ;;  %553 = vrcp.f32 %v282_v2  ;;  %v285_v6 = vadd.f32 1.0, %v526_v3 }
  0xe5   :  { %v530_v7 = vpop.eup %529  ;;  %555 = vrcp.f32 %v290_v4  ;;  %v293_v8 = vadd.f32 1.0, %v528_v5 }
  0xe6   :  { %v532_v9 = vpop.eup %531  ;;  %557 = vrcp.f32 %v285_v6  ;;  %v284_v10 = vadd.f32 1.0, %v530_v7 }
  0xe7   :  { %v534_v11 = vpop.eup %533  ;;  %559 = vrcp.f32 %v293_v8  ;;  %v292_v12 = vadd.f32 1.0, %v532_v9 }
  0xe8   :  { %v536_v13 = vpop.eup %535  ;;  %561 = vrcp.f32 %v284_v10  ;;  %v287_v14 = vadd.f32 1.0, %v534_v11 }
  0xe9   :  { %v538_v15 = vpop.eup %537  ;;  %563 = vrcp.f32 %v292_v12  ;;  %v295_v16 = vadd.f32 1.0, %v536_v13 }
  0xea   :  { %v540_v17 = vpop.eup %539  ;;  %565 = vrcp.f32 %v287_v14  ;;  %v286_v18 = vadd.f32 1.0, %v538_v15 }
  0xeb   :  { %v542_v19 = vpop.eup %541  ;;  %567 = vrcp.f32 %v295_v16  ;;  %v294_v22 = vadd.f32 1.0, %v540_v17 }
  0xec   :  { %v544_v23 = vpop.eup %543  ;;  %569 = vrcp.f32 %v286_v18  ;;  %v329_v30 = vmul.f32 %v542_v19, %v674_v20 }
  0xed   :  { %v546_v26 = vpop.eup %545  ;;  %571 = vrcp.f32 %v294_v22  ;;  %v337_v35 = vmul.f32 %v544_v23, %v676_v21 }
  0xee   :  { %v548_v27 = vpop.eup %547  ;;  %v328_v31 = vmul.f32 %v546_v26, %v680_v24  ;;  %v345_v50 = vsel %vm38_vm0, %v329_v30, 0.0 }
  0xef   :  { %v550_v34 = vpop.eup %549  ;;  %v336_v38 = vmul.f32 %v548_v27, %v682_v25  ;;  %v366_v24 = vsel %vm38_vm0, %v337_v35, 0.0 }
  0xf0   :  { %v552_v39 = vpop.eup %551  ;;  %v344_v42 = vsel %vm38_vm0, %v328_v31, 0.0  ;;  %v331_v51 = vmul.f32 %v550_v34, %v686_v28 }
  0xf1   :  { %v554_v43 = vpop.eup %553  ;;  %v365_v46 = vsel %vm38_vm0, %v336_v38, 0.0  ;;  %v346_v53 = vadd.f32 %v345_v50, %v344_v42  ;;  %v339_v21 = vmul.f32 %v552_v39, %v688_v29  ;;  %v448_v42 = vld [vmem:[%s765_s2] ss:$0 sm:$0xff] }
  0xf2   :  { %v556_v47 = vpop.eup %555  ;;  %v330_v20 = vmul.f32 %v554_v43, %v692_v32  ;;  %v367_v55 = vadd.f32 %v366_v24, %v365_v46  ;;  %v349_v28 = vsel %vm38_vm0, %v331_v51, 0.0  ;;  %v409_v24 = vstv %s766_s3 }
  0xf3   :  { %v558_v52 = vpop.eup %557  ;;  %v338_v25 = vmul.f32 %v556_v47, %v694_v33  ;;  %v370_v29 = vsel %vm38_vm0, %v339_v21, 0.0 }
  0xf4   :  { %v560_v54 = vpop.eup %559  ;;  %v347_v56 = vsel %vm38_vm0, %v330_v20, 0.0  ;;  %v333_v61 = vmul.f32 %v558_v52, %v698_v36 }
  0xf5   :  { %v562_v57 = vpop.eup %561  ;;  %v348_v58 = vadd.f32 %v347_v56, %v346_v53  ;;  %v368_v59 = vsel %vm38_vm0, %v338_v25, 0.0  ;;  %v341_v33 = vmul.f32 %v560_v54, %v700_v37 }
  0xf6   :  { %v564_v60 = vpop.eup %563  ;;  %v369_v32 = vadd.f32 %v368_v59, %v367_v55  ;;  %v332_v62 = vmul.f32 %v562_v57, %v704_v40  ;;  %v353_v36 = vsel %vm38_vm0, %v333_v61, 0.0 }
  0xf7   :  { %v566_v63 = vpop.eup %565  ;;  %v350_v0 = vadd.f32 %v349_v28, %v348_v58  ;;  %v340_v1 = vmul.f32 %v564_v60, %v706_v41  ;;  %v374_v37 = vsel %vm38_vm0, %v341_v33, 0.0 }
  0xf8   :  { %v568_v2 = vpop.eup %567  ;;  %v351_v3 = vsel %vm38_vm0, %v332_v62, 0.0  ;;  %v371_v4 = vadd.f32 %v370_v29, %v369_v32  ;;  %v335_v9 = vmul.f32 %v566_v63, %v710_v44 }
  0xf9   :  { %v570_v5 = vpop.eup %569  ;;  %v352_v6 = vadd.f32 %v351_v3, %v350_v0  ;;  %v372_v7 = vsel %vm38_vm0, %v340_v1, 0.0  ;;  %v343_v41 = vmul.f32 %v568_v2, %v712_v45 }
  0xfa   :  { %v572_v8 = vpop.eup %571  ;;  %v373_v40 = vadd.f32 %v372_v7, %v371_v4  ;;  %v334_v10 = vmul.f32 %v570_v5, %v716_v48  ;;  %v357_v17 = vsel %vm38_vm0, %v335_v9, 0.0 }
  0xfb   :  { %v354_v11 = vadd.f32 %v353_v36, %v352_v6  ;;  %v342_v12 = vmul.f32 %v572_v8, %v718_v49  ;;  %v378_v44 = vsel %vm38_vm0, %v343_v41, 0.0 }
  0xfc   :  { %v355_v13 = vsel %vm38_vm0, %v334_v10, 0.0  ;;  %v375_v14 = vadd.f32 %v374_v37, %v373_v40 }
  0xfd   :  { %v356_v15 = vadd.f32 %v355_v13, %v354_v11  ;;  %v376_v16 = vsel %vm38_vm0, %v342_v12, 0.0 }
  0xfe   :  { %v377_v18 = vadd.f32 %v376_v16, %v375_v14 }
  0xff   :  { %v358_v19 = vadd.f32 %v357_v17, %v356_v15 }
 0x100   :  { %v379_v48 = vadd.f32 %v378_v44, %v377_v18 }
 0x101   :  { %v359_v22 = vrot.slane %v358_v19, 4 }
 0x102   :  { %v380_v23 = vrot.slane %v379_v48, 4 }
 0x103   :  { %v360_v26 = vadd.f32 %v359_v22, %v358_v19 }
 0x104   :  { %v381_v45 = vadd.f32 %v380_v23, %v379_v48 }
 0x105   :  { %v361_v27 = vrot.slane %v360_v26, 2 }
 0x106   :  { %v382_v30 = vrot.slane %v381_v45, 2 }
 0x107   :  { %v362_v49 = vadd.f32 %v361_v27, %v360_v26 }
 0x108   :  { %v383_v31 = vadd.f32 %v382_v30, %v381_v45 }
 0x109   :  { %v363_v34 = vrot.slane %v362_v49, 1 }
 0x10a   :  { %v384_v35 = vrot.slane %v383_v31, 1 }
 0x10b   :  { %v364_v38 = vadd.f32 %v363_v34, %v362_v49 }
 0x10c   :  { %v385_v39 = vadd.f32 %v384_v35, %v383_v31 }
 0x10d   :  { %v387_v43 = vmul.f32 0.015625, %v364_v38 }
 0x10e   :  { %v388_v46 = vmul.f32 0.015625, %v385_v39 }
 0x10f   :  { %v396_v50 = vmul.f32 %v448_v42, %v387_v43 }
 0x110   :  { %v397_v47 = vmul.f32 %v448_v42, %v388_v46 }
 0x112   :  { %v400_v51 = vrot.slane %v397_v47, 7 }
 0x114   :  { %v402_v20 = vsel %vm401_vm1, %v400_v51, %v396_v50 }
 0x115   :  { %v405_v52 = vsel %vm404_vm2, %v402_v20, 0.0 }
 0x116   :  { %406 = vadd.xlane.f32.xlu0 %v405_v52 }
 0x19f   :  { %v407_v53 = vpop.xlane.xlu0 %406 }
 0x1a0   :  { %v410_v21 = vadd.f32 %v409_v24, %v407_v53 }
 0x1a2   :  { %411 = vst [vmem:[%s767_s4] sm:$0x3] %v410_v21 }

</bundles_post_ra>
